<compile_context>
chip_gen: v6e
topology: v6e:2x2x1
jax: 0.10.0
libtpu: 0.0.40
codegen_flags: <defaults>
</compile_context>

<pallas_src>
import functools
import math

import jax
import jax.numpy as jnp
import numpy as np
from jax.experimental import pallas as pl
from jax.experimental.pallas import tpu as pltpu


def _mha_kernel(valid_ref,                        # SMEM (B,) int32 (scalar prefetch)
                q_ref, k_ref, v_ref,              # (BB,Tq,Dq), (BB,Tk,Dk), (BB,Tk,Dv)
                wq_ref, wk_ref, wv_ref, wo_ref,   # (Dq,H), (H,Dk), (Dv,H), (H,Hp)
                o_ref,                            # (BB,Tq,Hp)
                *, num_heads, head_dim, batch_block, compute_dtype):
    nh, dh, BB = num_heads, head_dim, batch_block
    Tq, Dq = q_ref.shape[1], q_ref.shape[2]
    Tk = k_ref.shape[1]
    cdt = compute_dtype
    f32 = jnp.float32

    # Fold the batch block onto the sublane (M) axis for the projections.
    xq = q_ref[...].reshape(BB * Tq, Dq)
    xk = k_ref[...].reshape(BB * Tk, k_ref.shape[2])
    xv = v_ref[...].reshape(BB * Tk, v_ref.shape[2])

    # Full-width, lane-dense projections; f32 accumulation on the MXU.
    # (1/sqrt(dh) already folded into wq_ref host-side.)
    q_all = jnp.dot(xq.astype(cdt), wq_ref[...], preferred_element_type=f32)    # (BB*Tq, H)
    v_all = jnp.dot(xv.astype(cdt), wv_ref[...], preferred_element_type=f32)    # (BB*Tk, H)
    # K projection emitted already transposed: K^T = W_k @ x_k^T.  One 2-D
    # transpose of the (small) activation tile; Tk lands on the lane axis so
    # the scores matmul below is canonical (M,K)x(K,N).
    kT_all = jnp.dot(wk_ref[...], xk.astype(cdt).T, preferred_element_type=f32)  # (H, BB*Tk)

    neg_inf = f32(-1000000.0)            # same masking value as the reference
    col = jax.lax.broadcasted_iota(jnp.int32, (1, Tk), 1)
    base = pl.program_id(0) * BB

    # Per-(batch-row, head) attention.  BB and nh are small compile-time
    # constants here; every op is a plain 2-D MXU/VPU/EUP op.
    # TODO(synk): at production shapes fold (BB, nh) into batched einsums /
    # extra grid axes instead of a static unroll.
    row_ctx = []
    for bi in range(BB):
        valid_b = valid_ref[base + bi]                    # scalar int32 (SMEM)
        keep = col < valid_b                              # (1, Tk), broadcast compare
        head_ctx = []
        for h in range(nh):
            qh = q_all[bi * Tq:(bi + 1) * Tq, h * dh:(h + 1) * dh]      # (Tq, dh)
            khT = kT_all[h * dh:(h + 1) * dh, bi * Tk:(bi + 1) * Tk]    # (dh, Tk)
            vh = v_all[bi * Tk:(bi + 1) * Tk, h * dh:(h + 1) * dh]      # (Tk, dh)

            s = jnp.dot(qh.astype(cdt), khT.astype(cdt),
                        preferred_element_type=f32)                     # (Tq, Tk)
            s = jnp.where(keep, s, neg_inf)                             # length mask
            m = jnp.max(s, axis=-1, keepdims=True)
            e = jnp.exp(s - m)
            p = e / jnp.sum(e, axis=-1, keepdims=True)                  # exact divide (EUP)
            head_ctx.append(jnp.dot(p.astype(cdt), vh.astype(cdt),
                                    preferred_element_type=f32))        # (Tq, dh)
        row_ctx.append(jnp.concatenate(head_ctx, axis=-1))              # (Tq, H)

    ctx = jnp.concatenate(row_ctx, axis=0) if BB > 1 else row_ctx[0]    # (BB*Tq, H)

    # Head-concat + output projection fused into one deep (contraction = H)
    # matmul; the head reduction happens inside the MXU accumulator.
    out = jnp.dot(ctx.astype(cdt), wo_ref[...], preferred_element_type=f32)  # (BB*Tq, Hp)
    o_ref[...] = out.reshape(BB, Tq, o_ref.shape[2]).astype(o_ref.dtype)


def _pick_batch_block(batch):
    # A few rows per step amortizes the ~0.35us/step grid overhead and widens
    # the sublane extent of the projection matmuls, while keeping the
    # "parallel" grid extent >= 2 where possible (both v7x TensorCores busy).
    for bb in (4, 2):
        if batch % bb == 0 and batch // bb >= 2:
            return bb
    return 1


def multi_head_attention(queries, keys, values, valid_lens, wq, wk, wv, wo,
                         num_heads, *, compute_dtype=None, batch_block=None):
    B, Tq, Dq = queries.shape
    _, Tk, Dk = keys.shape
    _, _, Dv = values.shape
    H = wq.shape[0]
    assert H % num_heads == 0, "num_hiddens must be divisible by num_heads"
    assert wk.shape[0] == H and wv.shape[0] == H and wo.shape == (H, H)
    if valid_lens.ndim != 1:
        raise NotImplementedError("only per-batch-row (1-D) valid_lens supported")

    nh = num_heads
    dh = H // nh
    out_dtype = queries.dtype
    cdt = jnp.dtype(compute_dtype) if compute_dtype is not None else jnp.dtype(out_dtype)

    BB = batch_block if batch_block is not None else _pick_batch_block(B)
    assert B % BB == 0

    # Lane-dense output: pad output features to a multiple of 128 lanes so the
    # store is unmasked; pad is sliced off outside (no-op when H % 128 == 0).
    Hp = ((H + 127) // 128) * 128

    # One-time host-side weight re-layout (PyTorch (out, in) convention):
    #  * W_q -> (Dq, H) with the 1/sqrt(dh) score scale folded in.
    #  * W_k kept as (H, Dk): kernel computes K^T = W_k @ x_k^T directly.
    #  * W_v -> (Dv, H).   * W_o -> (H, H), zero-padded columns to Hp.
    scale = 1.0 / math.sqrt(dh)
    wq_slab = (wq * scale).T.astype(cdt)             # (Dq, H)
    wk_slab = wk.astype(cdt)                         # (H, Dk)
    wv_slab = wv.T.astype(cdt)                       # (Dv, H)
    wo_t = wo.T
    if Hp != H:
        wo_t = jnp.pad(wo_t, ((0, 0), (0, Hp - H)))
    wo_slab = wo_t.astype(cdt)                       # (H, Hp)

    q_in = queries.astype(cdt)
    k_in = keys.astype(cdt)
    v_in = values.astype(cdt)
    valid_lens = valid_lens.astype(jnp.int32)

    kernel = functools.partial(_mha_kernel, num_heads=nh, head_dim=dh,
                               batch_block=BB, compute_dtype=cdt)

    itemsize = jnp.dtype(cdt).itemsize
    flops = 2 * B * (Tq * Dq * H + Tk * Dk * H + Tk * Dv * H
                     + 2 * nh * Tq * Tk * dh + Tq * H * Hp)
    transcendentals = B * nh * Tq * Tk
    bytes_accessed = (itemsize * (B * (Tq * Dq + Tk * Dk + Tk * Dv)
                                  + H * (Dq + Dk + Dv + Hp))
                      + out_dtype.itemsize * B * Tq * Hp + 4 * B)
    cost_estimate = pl.CostEstimate(flops=int(flops),
                                    transcendentals=int(transcendentals),
                                    bytes_accessed=int(bytes_accessed))

    grid_spec = pltpu.PrefetchScalarGridSpec(
        num_scalar_prefetch=1,
        grid=(B // BB,),
        in_specs=[
            pl.BlockSpec((BB, Tq, Dq), lambda g, vl: (g, 0, 0)),
            pl.BlockSpec((BB, Tk, Dk), lambda g, vl: (g, 0, 0)),
            pl.BlockSpec((BB, Tk, Dv), lambda g, vl: (g, 0, 0)),
            # Weights: constant block index -> fetched once and kept resident.
            # TODO(synk): single-buffer these (pl.Buffered(1) or manual
            # resident-VMEM copy) at production H to reclaim double-buffer VMEM.
            pl.BlockSpec((Dq, H), lambda g, vl: (0, 0)),
            pl.BlockSpec((H, Dk), lambda g, vl: (0, 0)),
            pl.BlockSpec((Dv, H), lambda g, vl: (0, 0)),
            pl.BlockSpec((H, Hp), lambda g, vl: (0, 0)),
        ],
        out_specs=pl.BlockSpec((BB, Tq, Hp), lambda g, vl: (g, 0, 0)),
    )

    out = pl.pallas_call(
        kernel,
        out_shape=jax.ShapeDtypeStruct((B, Tq, Hp), out_dtype),
        grid_spec=grid_spec,
        compiler_params=pltpu.CompilerParams(
            dimension_semantics=("parallel",)),
        cost_estimate=cost_estimate,
    )(valid_lens, q_in, k_in, v_in, wq_slab, wk_slab, wv_slab, wo_slab)

    return out[..., :H] if Hp != H else out


def reference_mha(queries, keys, values, valid_lens, wq, wk, wv, wo, num_heads):
    """Pure-JAX mirror of the PyTorch forward (eval mode, dropout=0)."""
    with jax.default_matmul_precision("highest"):
        Q = queries @ wq.T
        K = keys @ wk.T
        V = values @ wv.T
        B, Tq, H = Q.shape
        Tk = K.shape[1]
        dh = H // num_heads
        Qh = Q.reshape(B, Tq, num_heads, dh).transpose(0, 2, 1, 3)
        Kh = K.reshape(B, Tk, num_heads, dh).transpose(0, 2, 1, 3)
        Vh = V.reshape(B, Tk, num_heads, dh).transpose(0, 2, 1, 3)
        scores = jnp.einsum('bhqd,bhkd->bhqk', Qh, Kh) / math.sqrt(dh)
        mask = jnp.arange(Tk)[None, None, None, :] < valid_lens[:, None, None, None]
        scores = jnp.where(mask, scores, -1000000.0)
        p = jax.nn.softmax(scores, axis=-1)
        ctx = jnp.einsum('bhqk,bhkd->bhqd', p, Vh)
        ctx = ctx.transpose(0, 2, 1, 3).reshape(B, Tq, H)
        return ctx @ wo.T


if __name__ == "__main__":
    B = 2
    Tq = 8
    Tk = 8
    key_size = query_size = value_size = 16
    num_hiddens = 32
    num_heads = 4

    key = jax.random.PRNGKey(0)
    kq, kk, kv, kwq, kwk, kwv, kwo = jax.random.split(key, 7)

    queries = jax.random.normal(kq, (B, Tq, query_size), dtype=jnp.float32)
    keys = jax.random.normal(kk, (B, Tk, key_size), dtype=jnp.float32)
    values = jax.random.normal(kv, (B, Tk, value_size), dtype=jnp.float32)
    valid_lens = jnp.array([3, 6], dtype=jnp.int32)

    # Deterministic "Linear" weights, PyTorch (out_features, in_features) convention.
    s = 1.0 / math.sqrt(num_hiddens)
    W_q = jax.random.uniform(kwq, (num_hiddens, query_size), jnp.float32, -s, s)
    W_k = jax.random.uniform(kwk, (num_hiddens, key_size), jnp.float32, -s, s)
    W_v = jax.random.uniform(kwv, (num_hiddens, value_size), jnp.float32, -s, s)
    W_o = jax.random.uniform(kwo, (num_hiddens, num_hiddens), jnp.float32, -s, s)

    ref = reference_mha(queries, keys, values, valid_lens,
                        W_q, W_k, W_v, W_o, num_heads)

    # f32 path: exact-order softmax (no approx reciprocal), tight parity.
    out = multi_head_attention(queries, keys, values, valid_lens,
                               W_q, W_k, W_v, W_o, num_heads)
    out = jax.block_until_ready(out)
    np.testing.assert_allclose(np.asarray(out), np.asarray(ref),
                               rtol=2e-3, atol=2e-3)

    # bf16 matmul-operand path (v6e/v7x MXU-friendly); softmax stays f32.
    out_bf16 = multi_head_attention(queries, keys, values, valid_lens,
                                    W_q, W_k, W_v, W_o, num_heads,
                                    compute_dtype=jnp.bfloat16)
    out_bf16 = jax.block_until_ready(out_bf16)
    np.testing.assert_allclose(np.asarray(out_bf16), np.asarray(ref),
                               rtol=5e-2, atol=5e-2)

    print("KERNEL_OK")
</pallas_src>

<mosaic_0001>
module attributes {stable_mosaic.version = 11 : i64} {
  func.func @_mha_kernel(%arg0: i32, %arg1: memref<2xi32, #tpu.memory_space<smem>>, %arg2: memref<1x8x16xf32, #tpu.memory_space<vmem>>, %arg3: memref<1x8x16xf32, #tpu.memory_space<vmem>>, %arg4: memref<1x8x16xf32, #tpu.memory_space<vmem>>, %arg5: memref<16x32xf32, #tpu.memory_space<vmem>>, %arg6: memref<32x16xf32, #tpu.memory_space<vmem>>, %arg7: memref<16x32xf32, #tpu.memory_space<vmem>>, %arg8: memref<32x128xf32, #tpu.memory_space<vmem>>, %arg9: memref<1x8x128xf32, #tpu.memory_space<vmem>>) attributes {dimension_semantics = [#tpu.dimension_semantics<parallel>], iteration_bounds = array<i64: 2>, scalar_prefetch = 1 : i64, scratch_operands = 0 : i64, tpu.core_type = #tpu.core_type<tc>, window_params = [{transform_indices = @transform_0, window_bounds = array<i64: 1, 8, 16>}, {transform_indices = @transform_1, window_bounds = array<i64: 1, 8, 16>}, {transform_indices = @transform_2, window_bounds = array<i64: 1, 8, 16>}, {pipeline_mode = #tpu.pipeline_mode<synchronous>, transform_indices = @transform_3, window_bounds = array<i64: 16, 32>}, {pipeline_mode = #tpu.pipeline_mode<synchronous>, transform_indices = @transform_4, window_bounds = array<i64: 32, 16>}, {pipeline_mode = #tpu.pipeline_mode<synchronous>, transform_indices = @transform_5, window_bounds = array<i64: 16, 32>}, {pipeline_mode = #tpu.pipeline_mode<synchronous>, transform_indices = @transform_6, window_bounds = array<i64: 32, 128>}, {transform_indices = @transform_7, window_bounds = array<i64: 1, 8, 128>}]} {
    %c0 = arith.constant 0 : index
    %c0_0 = arith.constant 0 : index
    %c0_1 = arith.constant 0 : index
    %0 = vector.load %arg2[%c0, %c0_0, %c0_1] : memref<1x8x16xf32, #tpu.memory_space<vmem>>, vector<1x8x16xf32>
    %1 = vector.shape_cast %0 : vector<1x8x16xf32> to vector<8x16xf32>
    %c0_2 = arith.constant 0 : index
    %c0_3 = arith.constant 0 : index
    %c0_4 = arith.constant 0 : index
    %2 = vector.load %arg3[%c0_2, %c0_3, %c0_4] : memref<1x8x16xf32, #tpu.memory_space<vmem>>, vector<1x8x16xf32>
    %3 = vector.shape_cast %2 : vector<1x8x16xf32> to vector<8x16xf32>
    %c0_5 = arith.constant 0 : index
    %c0_6 = arith.constant 0 : index
    %c0_7 = arith.constant 0 : index
    %4 = vector.load %arg4[%c0_5, %c0_6, %c0_7] : memref<1x8x16xf32, #tpu.memory_space<vmem>>, vector<1x8x16xf32>
    %5 = vector.shape_cast %4 : vector<1x8x16xf32> to vector<8x16xf32>
    %c0_8 = arith.constant 0 : index
    %c0_9 = arith.constant 0 : index
    %6 = vector.load %arg5[%c0_8, %c0_9] : memref<16x32xf32, #tpu.memory_space<vmem>>, vector<16x32xf32>
    %cst = arith.constant dense<0.000000e+00> : vector<8x32xf32>
    %7 = tpu.matmul %1, %6, %cst {dimension_numbers = #tpu.dot_dimension_numbers<[1], [0], [0], [1], [0, 0, 1, 1], [], []>} : vector<8x16xf32>, vector<16x32xf32>, vector<8x32xf32> -> vector<8x32xf32>
    %c0_10 = arith.constant 0 : index
    %c0_11 = arith.constant 0 : index
    %8 = vector.load %arg7[%c0_10, %c0_11] : memref<16x32xf32, #tpu.memory_space<vmem>>, vector<16x32xf32>
    %cst_12 = arith.constant dense<0.000000e+00> : vector<8x32xf32>
    %9 = tpu.matmul %5, %8, %cst_12 {dimension_numbers = #tpu.dot_dimension_numbers<[1], [0], [0], [1], [0, 0, 1, 1], [], []>} : vector<8x16xf32>, vector<16x32xf32>, vector<8x32xf32> -> vector<8x32xf32>
    %c0_13 = arith.constant 0 : index
    %c0_14 = arith.constant 0 : index
    %10 = vector.load %arg6[%c0_13, %c0_14] : memref<32x16xf32, #tpu.memory_space<vmem>>, vector<32x16xf32>
    %11 = tpu.transpose %3, [1, 0] : vector<8x16xf32> -> vector<16x8xf32>
    %cst_15 = arith.constant dense<0.000000e+00> : vector<32x8xf32>
    %12 = tpu.matmul %10, %11, %cst_15 {dimension_numbers = #tpu.dot_dimension_numbers<[1], [0], [0], [1], [0, 0, 1, 1], [], []>} : vector<32x16xf32>, vector<16x8xf32>, vector<32x8xf32> -> vector<32x8xf32>
    %13 = tpu.iota {dimensions = array<i32: 1>} : vector<1x8xi32>
    %c1_i32 = arith.constant 1 : i32
    %14 = arith.muli %arg0, %c1_i32 : i32
    %c0_i32 = arith.constant 0 : i32
    %15 = arith.addi %14, %c0_i32 : i32
    %16 = arith.index_cast %15 : i32 to index
    %17 = memref.load %arg1[%16] : memref<2xi32, #tpu.memory_space<smem>>
    %18 = vector.broadcast %17 : i32 to vector<1x8xi32>
    %19 = arith.cmpi slt, %13, %18 : vector<1x8xi32>
    %20 = vector.extract_strided_slice %7 {offsets = [0, 0], sizes = [8, 8], strides = [1, 1]} : vector<8x32xf32> to vector<8x8xf32>
    %21 = vector.extract_strided_slice %12 {offsets = [0, 0], sizes = [8, 8], strides = [1, 1]} : vector<32x8xf32> to vector<8x8xf32>
    %22 = vector.extract_strided_slice %9 {offsets = [0, 0], sizes = [8, 8], strides = [1, 1]} : vector<8x32xf32> to vector<8x8xf32>
    %cst_16 = arith.constant dense<0.000000e+00> : vector<8x8xf32>
    %23 = tpu.matmul %20, %21, %cst_16 {dimension_numbers = #tpu.dot_dimension_numbers<[1], [0], [0], [1], [0, 0, 1, 1], [], []>} : vector<8x8xf32>, vector<8x8xf32>, vector<8x8xf32> -> vector<8x8xf32>
    %cst_17 = arith.constant -1.000000e+06 : f32
    %24 = vector.shape_cast %19 : vector<1x8xi1> to vector<1x8xi1>
    %25 = vector.broadcast %24 : vector<1x8xi1> to vector<8x8xi1>
    %26 = vector.broadcast %cst_17 : f32 to vector<8x8xf32>
    %27 = arith.select %25, %23, %26 : vector<8x8xi1>, vector<8x8xf32>
    %cst_18 = arith.constant dense<0xFF800000> : vector<8xf32>
    %28 = vector.multi_reduction <maximumf>, %27, %cst_18 [1] : vector<8x8xf32> to vector<8xf32>
    %29 = vector.shape_cast %28 : vector<8xf32> to vector<8x1xf32>
    %30 = vector.broadcast %29 : vector<8x1xf32> to vector<8x8xf32>
    %31 = arith.subf %27, %30 : vector<8x8xf32>
    %32 = math.exp %31 : vector<8x8xf32>
    %cst_19 = arith.constant dense<0.000000e+00> : vector<8xf32>
    %33 = vector.multi_reduction <add>, %32, %cst_19 [1] : vector<8x8xf32> to vector<8xf32>
    %34 = vector.shape_cast %33 : vector<8xf32> to vector<8x1xf32>
    %35 = vector.broadcast %34 : vector<8x1xf32> to vector<8x8xf32>
    %36 = arith.divf %32, %35 : vector<8x8xf32>
    %cst_20 = arith.constant dense<0.000000e+00> : vector<8x8xf32>
    %37 = tpu.matmul %36, %22, %cst_20 {dimension_numbers = #tpu.dot_dimension_numbers<[1], [0], [0], [1], [0, 0, 1, 1], [], []>} : vector<8x8xf32>, vector<8x8xf32>, vector<8x8xf32> -> vector<8x8xf32>
    %38 = vector.extract_strided_slice %7 {offsets = [0, 8], sizes = [8, 8], strides = [1, 1]} : vector<8x32xf32> to vector<8x8xf32>
    %39 = vector.extract_strided_slice %12 {offsets = [8, 0], sizes = [8, 8], strides = [1, 1]} : vector<32x8xf32> to vector<8x8xf32>
    %40 = vector.extract_strided_slice %9 {offsets = [0, 8], sizes = [8, 8], strides = [1, 1]} : vector<8x32xf32> to vector<8x8xf32>
    %cst_21 = arith.constant dense<0.000000e+00> : vector<8x8xf32>
    %41 = tpu.matmul %38, %39, %cst_21 {dimension_numbers = #tpu.dot_dimension_numbers<[1], [0], [0], [1], [0, 0, 1, 1], [], []>} : vector<8x8xf32>, vector<8x8xf32>, vector<8x8xf32> -> vector<8x8xf32>
    %cst_22 = arith.constant -1.000000e+06 : f32
    %42 = vector.shape_cast %19 : vector<1x8xi1> to vector<1x8xi1>
    %43 = vector.broadcast %42 : vector<1x8xi1> to vector<8x8xi1>
    %44 = vector.broadcast %cst_22 : f32 to vector<8x8xf32>
    %45 = arith.select %43, %41, %44 : vector<8x8xi1>, vector<8x8xf32>
    %cst_23 = arith.constant dense<0xFF800000> : vector<8xf32>
    %46 = vector.multi_reduction <maximumf>, %45, %cst_23 [1] : vector<8x8xf32> to vector<8xf32>
    %47 = vector.shape_cast %46 : vector<8xf32> to vector<8x1xf32>
    %48 = vector.broadcast %47 : vector<8x1xf32> to vector<8x8xf32>
    %49 = arith.subf %45, %48 : vector<8x8xf32>
    %50 = math.exp %49 : vector<8x8xf32>
    %cst_24 = arith.constant dense<0.000000e+00> : vector<8xf32>
    %51 = vector.multi_reduction <add>, %50, %cst_24 [1] : vector<8x8xf32> to vector<8xf32>
    %52 = vector.shape_cast %51 : vector<8xf32> to vector<8x1xf32>
    %53 = vector.broadcast %52 : vector<8x1xf32> to vector<8x8xf32>
    %54 = arith.divf %50, %53 : vector<8x8xf32>
    %cst_25 = arith.constant dense<0.000000e+00> : vector<8x8xf32>
    %55 = tpu.matmul %54, %40, %cst_25 {dimension_numbers = #tpu.dot_dimension_numbers<[1], [0], [0], [1], [0, 0, 1, 1], [], []>} : vector<8x8xf32>, vector<8x8xf32>, vector<8x8xf32> -> vector<8x8xf32>
    %56 = vector.extract_strided_slice %7 {offsets = [0, 16], sizes = [8, 8], strides = [1, 1]} : vector<8x32xf32> to vector<8x8xf32>
    %57 = vector.extract_strided_slice %12 {offsets = [16, 0], sizes = [8, 8], strides = [1, 1]} : vector<32x8xf32> to vector<8x8xf32>
    %58 = vector.extract_strided_slice %9 {offsets = [0, 16], sizes = [8, 8], strides = [1, 1]} : vector<8x32xf32> to vector<8x8xf32>
    %cst_26 = arith.constant dense<0.000000e+00> : vector<8x8xf32>
    %59 = tpu.matmul %56, %57, %cst_26 {dimension_numbers = #tpu.dot_dimension_numbers<[1], [0], [0], [1], [0, 0, 1, 1], [], []>} : vector<8x8xf32>, vector<8x8xf32>, vector<8x8xf32> -> vector<8x8xf32>
    %cst_27 = arith.constant -1.000000e+06 : f32
    %60 = vector.shape_cast %19 : vector<1x8xi1> to vector<1x8xi1>
    %61 = vector.broadcast %60 : vector<1x8xi1> to vector<8x8xi1>
    %62 = vector.broadcast %cst_27 : f32 to vector<8x8xf32>
    %63 = arith.select %61, %59, %62 : vector<8x8xi1>, vector<8x8xf32>
    %cst_28 = arith.constant dense<0xFF800000> : vector<8xf32>
    %64 = vector.multi_reduction <maximumf>, %63, %cst_28 [1] : vector<8x8xf32> to vector<8xf32>
    %65 = vector.shape_cast %64 : vector<8xf32> to vector<8x1xf32>
    %66 = vector.broadcast %65 : vector<8x1xf32> to vector<8x8xf32>
    %67 = arith.subf %63, %66 : vector<8x8xf32>
    %68 = math.exp %67 : vector<8x8xf32>
    %cst_29 = arith.constant dense<0.000000e+00> : vector<8xf32>
    %69 = vector.multi_reduction <add>, %68, %cst_29 [1] : vector<8x8xf32> to vector<8xf32>
    %70 = vector.shape_cast %69 : vector<8xf32> to vector<8x1xf32>
    %71 = vector.broadcast %70 : vector<8x1xf32> to vector<8x8xf32>
    %72 = arith.divf %68, %71 : vector<8x8xf32>
    %cst_30 = arith.constant dense<0.000000e+00> : vector<8x8xf32>
    %73 = tpu.matmul %72, %58, %cst_30 {dimension_numbers = #tpu.dot_dimension_numbers<[1], [0], [0], [1], [0, 0, 1, 1], [], []>} : vector<8x8xf32>, vector<8x8xf32>, vector<8x8xf32> -> vector<8x8xf32>
    %74 = vector.extract_strided_slice %7 {offsets = [0, 24], sizes = [8, 8], strides = [1, 1]} : vector<8x32xf32> to vector<8x8xf32>
    %75 = vector.extract_strided_slice %12 {offsets = [24, 0], sizes = [8, 8], strides = [1, 1]} : vector<32x8xf32> to vector<8x8xf32>
    %76 = vector.extract_strided_slice %9 {offsets = [0, 24], sizes = [8, 8], strides = [1, 1]} : vector<8x32xf32> to vector<8x8xf32>
    %cst_31 = arith.constant dense<0.000000e+00> : vector<8x8xf32>
    %77 = tpu.matmul %74, %75, %cst_31 {dimension_numbers = #tpu.dot_dimension_numbers<[1], [0], [0], [1], [0, 0, 1, 1], [], []>} : vector<8x8xf32>, vector<8x8xf32>, vector<8x8xf32> -> vector<8x8xf32>
    %cst_32 = arith.constant -1.000000e+06 : f32
    %78 = vector.shape_cast %19 : vector<1x8xi1> to vector<1x8xi1>
    %79 = vector.broadcast %78 : vector<1x8xi1> to vector<8x8xi1>
    %80 = vector.broadcast %cst_32 : f32 to vector<8x8xf32>
    %81 = arith.select %79, %77, %80 : vector<8x8xi1>, vector<8x8xf32>
    %cst_33 = arith.constant dense<0xFF800000> : vector<8xf32>
    %82 = vector.multi_reduction <maximumf>, %81, %cst_33 [1] : vector<8x8xf32> to vector<8xf32>
    %83 = vector.shape_cast %82 : vector<8xf32> to vector<8x1xf32>
    %84 = vector.broadcast %83 : vector<8x1xf32> to vector<8x8xf32>
    %85 = arith.subf %81, %84 : vector<8x8xf32>
    %86 = math.exp %85 : vector<8x8xf32>
    %cst_34 = arith.constant dense<0.000000e+00> : vector<8xf32>
    %87 = vector.multi_reduction <add>, %86, %cst_34 [1] : vector<8x8xf32> to vector<8xf32>
    %88 = vector.shape_cast %87 : vector<8xf32> to vector<8x1xf32>
    %89 = vector.broadcast %88 : vector<8x1xf32> to vector<8x8xf32>
    %90 = arith.divf %86, %89 : vector<8x8xf32>
    %cst_35 = arith.constant dense<0.000000e+00> : vector<8x8xf32>
    %91 = tpu.matmul %90, %76, %cst_35 {dimension_numbers = #tpu.dot_dimension_numbers<[1], [0], [0], [1], [0, 0, 1, 1], [], []>} : vector<8x8xf32>, vector<8x8xf32>, vector<8x8xf32> -> vector<8x8xf32>
    %92 = tpu.concatenate %37, %55, %73, %91 in 1 : vector<8x8xf32>, vector<8x8xf32>, vector<8x8xf32>, vector<8x8xf32> -> vector<8x32xf32>
    %c0_36 = arith.constant 0 : index
    %c0_37 = arith.constant 0 : index
    %93 = vector.load %arg8[%c0_36, %c0_37] : memref<32x128xf32, #tpu.memory_space<vmem>>, vector<32x128xf32>
    %cst_38 = arith.constant dense<0.000000e+00> : vector<8x128xf32>
    %94 = tpu.matmul %92, %93, %cst_38 {dimension_numbers = #tpu.dot_dimension_numbers<[1], [0], [0], [1], [0, 0, 1, 1], [], []>} : vector<8x32xf32>, vector<32x128xf32>, vector<8x128xf32> -> vector<8x128xf32>
    %95 = vector.shape_cast %94 : vector<8x128xf32> to vector<1x8x128xf32>
    %c0_39 = arith.constant 0 : index
    %c0_40 = arith.constant 0 : index
    %c0_41 = arith.constant 0 : index
    %96 = vector.load %arg9[%c0_39, %c0_40, %c0_41] : memref<1x8x128xf32, #tpu.memory_space<vmem>>, vector<1x8x128xf32>
    tpu.vector_store %arg9[%c0_39, %c0_40, %c0_41], %95 {strides = array<i32>} : memref<1x8x128xf32, #tpu.memory_space<vmem>>, vector<1x8x128xf32>,
    return
  }
  func.func @transform_0(%arg0: i32, %arg1: memref<2xi32, #tpu.memory_space<smem>>) -> (i32, i32, i32) {
    %c0_i32 = arith.constant 0 : i32
    %c0_i32_0 = arith.constant 0 : i32
    %c0_i32_1 = arith.constant 0 : i32
    return %arg0, %c0_i32, %c0_i32_0 : i32, i32, i32
  }
  func.func @transform_1(%arg0: i32, %arg1: memref<2xi32, #tpu.memory_space<smem>>) -> (i32, i32, i32) {
    %c0_i32 = arith.constant 0 : i32
    %c0_i32_0 = arith.constant 0 : i32
    %c0_i32_1 = arith.constant 0 : i32
    return %arg0, %c0_i32, %c0_i32_0 : i32, i32, i32
  }
  func.func @transform_2(%arg0: i32, %arg1: memref<2xi32, #tpu.memory_space<smem>>) -> (i32, i32, i32) {
    %c0_i32 = arith.constant 0 : i32
    %c0_i32_0 = arith.constant 0 : i32
    %c0_i32_1 = arith.constant 0 : i32
    return %arg0, %c0_i32, %c0_i32_0 : i32, i32, i32
  }
  func.func @transform_3(%arg0: i32, %arg1: memref<2xi32, #tpu.memory_space<smem>>) -> (i32, i32) {
    %c0_i32 = arith.constant 0 : i32
    %c0_i32_0 = arith.constant 0 : i32
    %c0_i32_1 = arith.constant 0 : i32
    return %c0_i32, %c0_i32_0 : i32, i32
  }
  func.func @transform_4(%arg0: i32, %arg1: memref<2xi32, #tpu.memory_space<smem>>) -> (i32, i32) {
    %c0_i32 = arith.constant 0 : i32
    %c0_i32_0 = arith.constant 0 : i32
    %c0_i32_1 = arith.constant 0 : i32
    return %c0_i32, %c0_i32_0 : i32, i32
  }
  func.func @transform_5(%arg0: i32, %arg1: memref<2xi32, #tpu.memory_space<smem>>) -> (i32, i32) {
    %c0_i32 = arith.constant 0 : i32
    %c0_i32_0 = arith.constant 0 : i32
    %c0_i32_1 = arith.constant 0 : i32
    return %c0_i32, %c0_i32_0 : i32, i32
  }
  func.func @transform_6(%arg0: i32, %arg1: memref<2xi32, #tpu.memory_space<smem>>) -> (i32, i32) {
    %c0_i32 = arith.constant 0 : i32
    %c0_i32_0 = arith.constant 0 : i32
    %c0_i32_1 = arith.constant 0 : i32
    return %c0_i32, %c0_i32_0 : i32, i32
  }
  func.func @transform_7(%arg0: i32, %arg1: memref<2xi32, #tpu.memory_space<smem>>) -> (i32, i32, i32) {
    %c0_i32 = arith.constant 0 : i32
    %c0_i32_0 = arith.constant 0 : i32
    %c0_i32_1 = arith.constant 0 : i32
    return %arg0, %c0_i32, %c0_i32_0 : i32, i32, i32
  }
}

</mosaic_0001>

<bundles_post_ra>
// kernel: tpu_custom_call.1
= control target key start
LH: loop header
LB: loop body
LE: loop exit
PB: predicated region body
PF: predicated region fallthrough
CT: control target
= control target key end

     0   :  { %s2385_s0 = inlined_call_operand.vmem [shape: s32[2], index: 0, kind: input, shape index: {}]   ;;  %s2386_s1 = inlined_call_operand.vmem [shape: f32[2,8,16], index: 1, kind: input, shape index: {}]   ;;  %s2387_s2 = inlined_call_operand.hbm [shape: f32[2,8,16], index: 2, kind: input, shape index: {}]   ;;  %s2388_s3 = inlined_call_operand.hbm [shape: f32[2,8,16], index: 3, kind: input, shape index: {}]   ;;  %s2389_s4 = inlined_call_operand.hbm [shape: f32[16,32], index: 4, kind: input, shape index: {}]   ;;  %s2390_s5 = inlined_call_operand.vmem [shape: f32[32,16], index: 5, kind: input, shape index: {}]   ;;  %s2391_s6 = inlined_call_operand.hbm [shape: f32[16,32], index: 6, kind: input, shape index: {}]   ;;  %s2392_s7 = inlined_call_operand.vmem [shape: f32[32,128], index: 7, kind: input, shape index: {}]   ;;  %s2393_s8 = inlined_call_operand.hbm [shape: f32[2,8,128], index: 8, kind: output, shape index: {}]  }
   0x1   :  { %2399 = sst [smem:[#allocation21_spill]] %s2389_s4  ;;  %s13_s29 = sshll.u32 %s2385_s0, 4  ;;  %s14_s29 = int_to_ptr.vmem [resolvable:$true] %s13_s29 }
   0x2   :  { %2400 = sst [smem:[#allocation22_spill]] %s2391_s6  ;;  %s1768_s30 = scalar_lea.vmem %s14_s29, 16 }
   0x3   :  { %p1769_p0 = scmp.ne.s32.totalorder %s14_s29, %s1768_s30  ;;  %p1773_p1 = scmp.lt.s32.totalorder %s14_s29, %s14_s29 }
   0x4   :  { %p1774_p2 = scmp.lt.s32.totalorder %s1768_s30, %s1768_s30 }
   0x6   :  { %p1775_p3 = por %p1774_p2, %p1773_p1 }
   0x8   :  { %p1776_p4 = pnand %p1775_p3, %p1769_p0 }
   0xa   :  { %1779 = shalt.err (!%p1776_p4)  }
   0xb   :  { %s1968_s9 = smov [#allocation3]  }
   0xc   :  { %16 = dma.vmem_to_smem %s14_s29, 16, %s1968_s9, [#allocation2] }
   0xd   :  { %1930 = dma.done.wait [#allocation2], 16 }
   0xe   :  { %1931 = vsyncadd [#allocation2], 4294967280 }
   0xf   :  { %18 = sfence }
  0x10   :  { %19 = vsyncpa [#allocation5], 0 }
  0x11   :  { %21 = vsyncpa [#allocation5 + $0x1], 0 }
  0x12   :  { %22 = vsyncpa [#allocation8], 0 }
  0x13   :  { %24 = vsyncpa [#allocation8 + $0x1], 0 }
  0x14   :  { %25 = vsyncpa [#allocation11], 0 }
  0x15   :  { %26 = vsyncpa [#allocation6], 0 }
  0x16   :  { %28 = vsyncpa [#allocation6 + $0x1], 0  ;;  %s2032_s0 = smov 0   ;;  %s2034_s10 = smov 0  }
  0x17   :  { %s2036_s11 = smov 0   ;;  %s2038_s12 = smov 0  }
  0x18 LB: > { %2401 = sst [smem:[#allocation19_spill]] %s1962_s11  ;;  %s2053_s13 = sadd.s32 4294967295, %s1966_s12   ;;  %s1966_s12 = sphi %s2038_s12, %s2427_s12   ;;  %s1962_s11 = sphi %s2036_s11, %s2424_s11   ;;  %s1958_s10 = sphi %s2034_s10, %s2426_s10   ;;  %s1954_s0 = sphi %s2032_s0, %s2425_s0  }
  0x19   : > { %s1528_s14 = sadd.s32 4294967294, %s1966_s12   ;;  %p80_p5 = scmp.ne.s32.totalorder %s1958_s10, %s1954_s0 }
  0x1a   : > { %p2394_p6 = scmp.eq.s32.totalorder %s2053_s13, 0  ;;  %p220_p8 = scmp.eq.s32.totalorder %s1528_s14, 1 }
  0x1b   : > { %p1529_p10 = scmp.ge.s32.totalorder %s1966_s12, 1  ;;  %p227_p12 = scmp.lt.s32.totalorder %s1966_s12, 3 }
  0x1c   : > { %p2062_p9 = por %p2394_p6, %p80_p5  ;;  %p2067_p11 = por %p220_p8, %p80_p5 }
  0x1d   : > { %p2072_p13 = pnand %p1529_p10, %p227_p12  ;;  %s1969_s18 = smov [#allocation9]  }
  0x1e   : > { %s2402_s15 = scalar_select %p2062_p9, 1, 0 }
  0x1f   : > { %s2403_s16 = scalar_select %p2067_p11, 1, 0 }
  0x20   : > { %s2404_s17 = scalar_select %p2072_p13, 1, 0 }
  0x21   : > { %s239_s19 = sshll.u32 %s1969_s18, 4  ;;  %p1683_p0 = pneg %p2072_p13  ;;  %s240_s19 = int_to_ptr.vmem [resolvable:$true] %s239_s19 }
  0x22   : > { %s1970_s21 = smov [#allocation10]   ;;  %s1791_s23 = scalar_lea.vmem %s240_s19, 256 }
  0x23   : > { %p2081_p2 = pnand %p1683_p0, %p2394_p6  ;;  %s255_s22 = sshll.u32 %s1970_s21, 4  ;;  %s256_s22 = int_to_ptr.vmem [resolvable:$true] %s255_s22 }
  0x24   : > { %p1792_p4 = scmp.ne.s32.totalorder %s240_s19, %s1791_s23  ;;  %p1799_p10 = scmp.lt.s32.totalorder %s240_s19, %s240_s19 }
  0x25   : > { %p1782_p3 = pneg %p2081_p2  ;;  %p1800_p12 = scmp.lt.s32.totalorder %s1791_s23, %s1791_s23 }
  0x27   : > { %p1794_p5 = pnand %p1792_p4, %p1782_p3  ;;  %p1801_p1 = por %p1800_p12, %p1799_p10 }
  0x29   : > { %p1795_p8 = pneg %p1794_p5 }
  0x2b   : > { %p1802_p0 = pnand %p1801_p1, %p1795_p8 }
  0x2d   : > { %1805 = shalt.err (!%p1802_p0)
}
  0x2e   : > { %s1971_s24 = smov 128   ;;  %s1972_s25 = smov 8  }
  0x2f   : > { %s2406_s4 = sld [smem:[#allocation21_spill]]  ;;  %s1817_s28 = scalar_lea.vmem %s256_s22, 256 }
  0x30   : > { %p1818_p6 = scmp.ne.s32.totalorder %s256_s22, %s1817_s28  ;;  %p1825_p7 = scmp.lt.s32.totalorder %s256_s22, %s256_s22 }
  0x31   : > { %p1826_p11 = scmp.lt.s32.totalorder %s1817_s28, %s1817_s28 }
  0x32   : > { %p1820_p4 = pnand %p1818_p6, %p1782_p3 }
  0x33   : > { %p1827_p10 = por %p1826_p11, %p1825_p7 }
  0x34   : > { %p1821_p5 = pneg %p1820_p4 }
  0x35   : > { %1686 = dma.hbm_to_vmem [thread:$0]  (!%p2081_p2), %s2406_s4, 256, %s240_s19, [#allocation8], %s1971_s24, %s1971_s24, %s1972_s25  }
  0x36   : > { %p1828_p1 = pnand %p1827_p10, %p1821_p5 }
  0x38   : > { %1831 = shalt.err (!%p1828_p1)
}
  0x39   : > { %s2407_s6 = sld [smem:[#allocation22_spill]]  ;;  %s2104_s9 = sadd.s32 1, %s1966_s12  }
  0x3a   : > { %s67_s14 = sadd.s32 1, %s1962_s11  ;;  %s64_s18 = ssub.s32 %s1966_s12, %s2104_s9 }
  0x3b   : > { %p74_p6 = scmp.ne.s32.totalorder %s1962_s11, %s1958_s10  ;;  %p65_p7 = scmp.eq.s32.totalorder %s64_s18, 0 }
  0x3c   : > { %p75_p11 = scmp.eq.s32.totalorder %s1966_s12, 0  ;;  %p2408_p3 = scmp.eq.s32.totalorder %s2053_s13, 1 }
  0x3d   : > { %p1703_p12 = scmp.lt.s32.totalorder %s1966_s12, 2  ;;  %s279_s21 = sand.u32 1, %s1962_s11  }
  0x3e   : > { %p2114_p8 = por %p2408_p3, %p74_p6  ;;  %p76_p0 = por %p75_p11, %p74_p6 }
  0x3f   : > { %1689 = dma.hbm_to_vmem [thread:$0]  (!%p2081_p2), %s2407_s6, 256, %s256_s22, [#allocation11], %s1971_s24, %s1971_s24, %s1972_s25  }
  0x40   : > { %s2409_s19 = scalar_select %p2114_p8, 1, 0 }
  0x41   : > { %s2120_s20 = scalar_select %p65_p7, %s1962_s11, %s67_s14  }
  0x42   : > { %s2123_s22 = sshll.u32 %s279_s21, 3  ;;  %s1534_s23 = sshll.u32 %s1966_s12, 7 }
  0x43   : > { %2410 = sst [smem:[#allocation20_spill]] %s2120_s20  ;;  %s2129_s26 = scalar_lea.hbm %s2387_s2, %s1534_s23 }
  0x44   : > { %s283_s27 = scalar_lea.vmem [#allocation4], %s2123_s22  ;;  %p2134_p2 = pnand %p1703_p12, %p76_p0 }
  0x45   : > { %s290_s28 = sshll.u32 %s283_s27, 4  ;;  %s2141_s18 = scalar_lea.hbm %s2388_s3, %s1534_s23  ;;  %s2132_s28 = int_to_ptr.vmem [resolvable:$true] %s290_s28 }
  0x46   : > { %s297_s24 = sand.u32 1, %s1966_s12   ;;  %s280_s25 = scalar_lea.sflag [#allocation5], %s279_s21 }
  0x47   : > { %s1832_s4 = scalar_lea.hbm %s2129_s26, 128  ;;  %p1834_p5 = pneg %p2134_p2 }
  0x48   : > { %p1833_p4 = scmp.ne.s32.totalorder %s2129_s26, %s1832_s4  ;;  %s1837_s20 = scalar_lea.hbm %s2387_s2, 256 }
  0x49   : > { %p1838_p6 = scmp.lt.s32.totalorder %s2129_s26, %s2387_s2  ;;  %p1839_p7 = scmp.lt.s32.totalorder %s1837_s20, %s1832_s4 }
  0x4a   : > { %p1835_p10 = pnand %p1834_p5, %p1833_p4 }
  0x4b   : > { %p1840_p11 = por %p1839_p7, %p1838_p6 }
  0x4c   : > { %p1836_p1 = pneg %p1835_p10 }
  0x4e   : > { %p1841_p3 = pnand %p1840_p11, %p1836_p1 }
  0x50   : > { %1844 = shalt.err (!%p1841_p3)
}
  0x51   : > { %s1845_s21 = scalar_lea.vmem %s2132_s28, 128  ;;  %s1973_s6 = smov [#allocation4]  }
  0x52   : > { %p1846_p12 = scmp.ne.s32.totalorder %s2132_s28, %s1845_s21  ;;  %s1850_s23 = sshll.u32 %s1973_s6, 4  ;;  %s1851_s23 = int_to_ptr.vmem [resolvable:$false] %s1850_s23 }
  0x53   : > { %s1852_s14 = scalar_lea.vmem %s1851_s23, 256  ;;  %p1853_p10 = scmp.lt.s32.totalorder %s2132_s28, %s1851_s23 }
  0x54   : > { %p1848_p0 = pnand %p1846_p12, %p1834_p5  ;;  %p1854_p8 = scmp.lt.s32.totalorder %s1852_s14, %s1845_s21 }
  0x56   : > { %p1849_p4 = pneg %p1848_p0  ;;  %p1855_p9 = por %p1854_p8, %p1853_p10 }
  0x58   : > { %p1856_p6 = pnand %p1855_p9, %p1849_p4 }
  0x5a   : > { %1859 = shalt.err (!%p1856_p6)
}
  0x5b   : > { %1693 = dma.hbm_to_vmem [thread:$0]  (!%p2134_p2), %s2129_s26, 128, %s2132_s28, %s280_s25  }
  0x5c   : > { %s301_s4 = scalar_lea.vmem [#allocation7], %s2123_s22  ;;  %s298_s20 = scalar_lea.sflag [#allocation8], %s297_s24 }
  0x5d   : > { %s308_s11 = sshll.u32 %s301_s4, 4  ;;  %s1860_s27 = scalar_lea.hbm %s2141_s18, 128  ;;  %s309_s11 = int_to_ptr.vmem [resolvable:$true] %s308_s11 }
  0x5e   : > { %p1861_p8 = scmp.ne.s32.totalorder %s2141_s18, %s1860_s27  ;;  %s1865_s6 = scalar_lea.hbm %s2388_s3, 256 }
  0x5f   : > { %p1866_p7 = scmp.lt.s32.totalorder %s2141_s18, %s2388_s3  ;;  %p1867_p11 = scmp.lt.s32.totalorder %s1865_s6, %s1860_s27 }
  0x60   : > { %p1863_p9 = pnand %p1861_p8, %p1834_p5 }
  0x61   : > { %p1868_p3 = por %p1867_p11, %p1866_p7 }
  0x62   : > { %p1864_p1 = pneg %p1863_p9 }
  0x64   : > { %p1869_p12 = pnand %p1868_p3, %p1864_p1 }
  0x66   : > { %1872 = shalt.err (!%p1869_p12)
}
  0x67   : > { %s1873_s22 = scalar_lea.vmem %s309_s11, 128  ;;  %s1974_s26 = smov [#allocation7]  }
  0x68   : > { %p1874_p0 = scmp.ne.s32.totalorder %s309_s11, %s1873_s22  ;;  %s1878_s28 = sshll.u32 %s1974_s26, 4  ;;  %s1879_s28 = int_to_ptr.vmem [resolvable:$false] %s1878_s28 }
  0x69   : > { %s1880_s24 = scalar_lea.vmem %s1879_s28, 256  ;;  %p1881_p6 = scmp.lt.s32.totalorder %s309_s11, %s1879_s28 }
  0x6a   : > { %p1876_p4 = pnand %p1874_p0, %p1834_p5  ;;  %p1882_p8 = scmp.lt.s32.totalorder %s1880_s24, %s1873_s22 }
  0x6c   : > { %p1877_p10 = pneg %p1876_p4  ;;  %p1883_p9 = por %p1882_p8, %p1881_p6 }
  0x6e   : > { %p1884_p13 = pnand %p1883_p9, %p1877_p10 }
  0x70   : > { %1887 = shalt.err (!%p1884_p13)
}
  0x71   : > { %1696 = dma.hbm_to_vmem [thread:$0]  (!%p2134_p2), %s2141_s18, 128, %s309_s11, %s298_s20  }
  0x72   : > { %p2412_p1 = scmp.ne.s32.totalorder %s2404_s17, 0 }
  0x73   : > { %s2192_s25 = sand.u32 (!%p2412_p1), 1, %s1958_s10   ;;  %p2413_p5 = scmp.ne.s32.totalorder (!%p2412_p1), %s2402_s15, 0 }
  0x74   : > { %317 = sbr.rel (%p2412_p1) target bundleno = 1522 (0x5f2), region = 48  ;;  %s2195_s4 = sshll.u32 (!%p2412_p1), %s2192_s25, 3 }
  0x75   : > { %s320_s27 = scalar_lea.sflag (!%p2412_p1), [#allocation5], %s2192_s25  ;;  %s323_s30 = scalar_lea.vmem (!%p2412_p1), [#allocation4], %s2195_s4 }
  0x79   : > { %1933 = dma.done.wait (%p2413_p5), %s320_s27, 128  }
  0x7a   : > { %1935 = vsyncadd (%p2413_p5), %s320_s27, 4294967168  ;;  %s328_s17 = sand.u32 1, %s2053_s13   ;;  %s332_s18 = scalar_lea.vmem [#allocation7], %s2195_s4 }
  0x7b   : > { %s329_s29 = scalar_lea.sflag [#allocation8], %s328_s17 }
  0x7c   : > { %1937 = dma.done.wait (%p2413_p5), %s329_s29, 128  }
  0x7d   : > { %1939 = vsyncadd (%p2413_p5), %s329_s29, 4294967168  ;;  %p2414_p13 = scmp.eq.s32.totalorder %s2053_s13, 0 }
  0x7f   : > { %1941 = dma.done.wait (%p2414_p13), [#allocation8], 256   ;;  %p2415_p2 = pmov %p2414_p13 }
  0x81   : > { %1943 = vsyncadd (%p2415_p2), [#allocation8], 4294967040  ;;  %p2416_p7 = pmov %p2415_p2 }
  0x82   : > { %p2417_p11 = pmov %p2415_p2 }
  0x83   : > { %1945 = dma.done.wait (%p2416_p7), [#allocation11], 256  }
  0x84   : > { %1947 = vsyncadd (%p2417_p11), [#allocation11], 4294967040  ;;  %p380_p3 = scmp.lt.s32.totalorder %s2053_s13, 1  ;;  %v1975_v0 = vmov 0.0   ;;  %vm1976_vm0 = vmmov 0   ;;  %vm389_vm1 = vcmask 130048   ;;  %v642_v23 = vlaneseq }
  0x85   : > { %1596 = vmatprep.subr.mxu1 %v1975_v0  ;;  %1600 = vmatprep.mubr.msk.f32.mxu1 %vm1976_vm0, %v1975_v0  ;;  %v388_v1 = vld [vmem:[#allocation9 + $0x8] sm:$0xff]  ;;  %v387_v3 = vld [vmem:[#allocation9] sm:$0xff]  ;;  %v464_v7 = vld [vmem:[#allocation10 + $0x8] sm:$0xff]  ;;  %s1977_s17 = smov 104   ;;  %s1978_s29 = smov 120   ;;  %vm647_vm2 = vcmask 64512  }
  0x86   : > { %s381_s15 = scalar_select %p380_p3, %s2053_s13, 1  ;;  %v385_v2 = vld [vmem:[%s323_s30] sm:$0xff]  ;;  %1597 = vmatpush3.msra.mxu1 %v388_v1  ;;  %v540_v8 = vld [vmem:[%s2390_s5 + $0x10] sm:$0xff]  ;;  %v541_v9 = vld [vmem:[%s2390_s5 + $0x18] sm:$0xff]  ;;  %v643_v24 = vand.u32 127, %v642_v23  ;;  %vm1309_vm4 = vcmask 195584  }
  0x87   : > { %1610 = vmatprep.subr.msk.mxu0 %vm389_vm1, %v385_v2  ;;  %v538_v5 = vld [vmem:[%s2390_s5] sm:$0xff]  ;;  %1598 = vmatprep.subr.mxu1 %v1975_v0  ;;  %v539_v6 = vld [vmem:[%s2390_s5 + $0x8] sm:$0xff]  ;;  %v463_v10 = vld [vmem:[#allocation10] sm:$0xff]  ;;  %s1980_s22 = smov 8   ;;  %s1981_s26 = smov 16   ;;  %vm1315_vm5 = vcmask 261120  }
  0x88   : > { %s1543_s11 = sshll.u32 %s381_s15, 3  ;;  %1611 = vmatpush3.xpose.msk.msra.mxu0 %vm389_vm1, %v385_v2  ;;  %1599 = vmatpush3.msra.mxu1 %v387_v3  ;;  %v386_v11 = vld [vmem:[%s332_s18] sm:$0xff]  ;;  %s1979_s18 = smov 112  }
  0x89   : > { %s383_s6 = scalar_lea.vmem %s2386_s1, %s1543_s11  ;;  %1612 = vmatprep.mubr.msk.f32.mxu0 %vm389_vm1, %v538_v5  ;;  %1603 = vmatprep.subr.mxu1 %v1975_v0  ;;  %s644_s15 = sld [smem:[#allocation3 + %s2053_s13]] }
  0x8a   : > { %v384_v4 = vld [vmem:[%s383_s6] sm:$0xff]  ;;  %1628 = vmatprep.subr.mxu0 %v1975_v0  ;;  %s1982_s27 = smov 24   ;;  %s379_s30 = scalar_lea.vmem [#allocation12], %s2195_s4 }
  0x8b   : > { %1601 = vmatmul.mubr.msk.f32.vlgmr.msra.gmra.mxu1 %vm389_vm1, %v384_v4  ;;  %1613 = vmatmul.mubr.msk.f32.vlgmr.msra.gmra.mxu0 %vm389_vm1, %v539_v6  ;;  %s1391_s20 = scalar_lea.sflag [#allocation6], %s2192_s25  ;;  %p2420_p0 = scmp.ne.s32.totalorder %s2409_s19, 0 }
  0x8c   : > { %1604 = vmatpush3.msra.mxu1 %v464_v7  ;;  %1615 = vmatprep.mubr.msk.f32.mxu0 %vm389_vm1, %v540_v8 }
  0x8d   : > { %1605 = vmatprep.subr.mxu1 %v1975_v0  ;;  %1607 = vmatprep.mubr.msk.f32.mxu1 %vm1976_vm0, %v1975_v0 }
  0x8e   : > { %1606 = vmatpush3.msra.mxu1 %v463_v10 }
  0x8f   : > { %1616 = vmatmul.mubr.msk.f32.gmra.mxu0 %vm389_vm1, %v541_v9  ;;  %1608 = vmatmul.mubr.msk.f32.vlgmr.msra.gmra.mxu1 %vm389_vm1, %v386_v11  ;;  %v645_v25 = vstv %s644_s15 }
  0x90   : > { %1630 = vmatprep.mubr.msk.f32.mxu0 %vm1976_vm0, %v1975_v0  ;;  %1618 = vmatprep.subr.mxu1 %v1975_v0  ;;  %vm2282_vm3 = vcmp.lt.s32.totalorder %v643_v24, %v645_v25  ;;  %v1311_v24 = vld [vmem:[%s2392_s7] sm:$0xff] }
  0x91   : > { %1620 = vmatprep.mubr.msk.f32.mxu1 %vm1976_vm0, %v1975_v0 }
 0x14b   : > { %v459_v12 = vpop.f32.mrf.mxu1  ;;  %v1614_v13 = vpop.f32.mrf.mxu0 }
 0x14c   : > { %1133 = vrot.lane.b32.xlu1 %v459_v12, %s1977_s17  ;;  %808 = vrot.lane.b32.xlu0 %v459_v12, %s1978_s29 }
 0x14d   : > { %v1602_v14 = vpop.f32.mrf.mxu1  ;;  %1629 = vmatpush3.msra.mxu0 %v1614_v13  ;;  %v623_v15 = vpop.f32.mrf.mxu0 }
 0x14e   : > { %1638 = vmatprep.subr.mxu0 %v1975_v0  ;;  %1619 = vmatpush3.msra.mxu1 %v623_v15 }
 0x14f   : > { %1621 = vmatmul.mubr.msk.f32.vlgmr.msra.gmra.mxu1 %vm647_vm2, %v459_v12  ;;  %1623 = vmatprep.subr.mxu1 %v1975_v0  ;;  %v2266_v16 = vpop.f32.mrf.mxu1  ;;  %v1617_v18 = vpop.f32.mrf.mxu0 }
 0x150   : > { %971 = vrot.lane.b32.xlu0 %v459_v12, %s1979_s18  ;;  %1625 = vmatprep.mubr.msk.f32.mxu1 %vm1976_vm0, %v1975_v0 }
 0x151   : > { %1624 = vmatpush3.msra.mxu1 %v2266_v16  ;;  %v1609_v17 = vpop.f32.mrf.mxu1  ;;  %v633_v19 = vpop.f32.mrf.mxu0 }
 0x152   : > { %1633 = vmatprep.subr.mxu1 %v1975_v0  ;;  %v1314_v17 = vld [vmem:[%s2392_s7 + $0x18] sm:$0xff] }
 0x1be   : > { %v809_v20 = vpop.permute.xlu0 %808  ;;  %v1134_v22 = vpop.permute.xlu1 %1133 }
 0x1bf   : > { %1631 = vmatmul.mubr.msk.f32.vlgmr.msra.gmra.mxu0 %vm647_vm2, %v809_v20 }
 0x1c0   : > { %1639 = vmatpush3.msra.mxu0 %v633_v19  ;;  %1640 = vmatprep.mubr.msk.f32.mxu0 %vm1976_vm0, %v1975_v0  ;;  %v1312_v19 = vld [vmem:[%s2392_s7 + $0x8] sm:$0xff] }
 0x1c1   : > { %1648 = vmatprep.subr.mxu0 %v1975_v0 }
 0x1c2   : > { %v972_v21 = vpop.permute.xlu0 %971 }
 0x1c3   : > { %1641 = vmatmul.mubr.msk.f32.vlgmr.msra.gmra.mxu0 %vm647_vm2, %v972_v21 }
 0x1c4   : > { %1649 = vmatpush3.msra.mxu0 %v1617_v18  ;;  %1650 = vmatprep.mubr.msk.f32.mxu0 %vm1976_vm0, %v1975_v0  ;;  %v1313_v18 = vld [vmem:[%s2392_s7 + $0x10] sm:$0xff] }
 0x1c5   : > { %1658 = vmatprep.subr.mxu0 %v1975_v0 }
 0x1c7   : > { %1651 = vmatmul.mubr.msk.f32.vlgmr.msra.gmra.mxu0 %vm647_vm2, %v1134_v22 }
 0x1c8   : > { %1666 = vmatprep.mubr.msk.f32.mxu0 %vm1976_vm0, %v1975_v0  ;;  %1659 = vmatpush3.msra.mxu0 %v1314_v17 }
 0x1c9   : > { %1660 = vmatprep.subr.mxu0 %v1975_v0 }
 0x1ca   : > { %1661 = vmatpush3.msra.mxu0 %v1313_v18 }
 0x1cb   : > { %1662 = vmatprep.subr.mxu0 %v1975_v0 }
 0x1cc   : > { %1663 = vmatpush3.msra.mxu0 %v1312_v19 }
 0x1cd   : > { %1664 = vmatprep.subr.mxu0 %v1975_v0 }
 0x1ce   : > { %1665 = vmatpush3.msra.mxu0 %v1311_v24 }
 0x20f   : > { %v717_v27 = vpop.f32.mrf.mxu1 }
 0x210   : > { %v723_v28 = vsel %vm2282_vm3, %v717_v27, -1000000.0 }
 0x211   : > { %v1622_v29 = vpop.f32.mrf.mxu1  ;;  %v724_v30 = vsel %vm647_vm2, %v723_v28, -inf }
 0x212   : > { %725 = vmax.xlane.f32.xlu1 %v724_v30 }
 0x27f   : > { %v878_v31 = vpop.f32.mrf.mxu0 }
 0x280   : > { %v882_v32 = vsel %vm2282_vm3, %v878_v31, -1000000.0 }
 0x281   : > { %v1632_v33 = vpop.f32.mrf.mxu0  ;;  %v883_v34 = vsel %vm647_vm2, %v882_v32, -inf }
 0x282   : > { %884 = vmax.xlane.f32.xlu0 %v883_v34 }
 0x283   : > { %v1041_v35 = vpop.f32.mrf.mxu0 }
 0x284   : > { %v1045_v36 = vsel %vm2282_vm3, %v1041_v35, -1000000.0 }
 0x285   : > { %v1642_v37 = vpop.f32.mrf.mxu0  ;;  %v1046_v38 = vsel %vm647_vm2, %v1045_v36, -inf }
 0x286   : > { %1047 = vmax.xlane.f32.xlu0 %v1046_v38 }
 0x287   : > { %v1203_v39 = vpop.f32.mrf.mxu0 }
 0x288   : > { %v1207_v40 = vsel %vm2282_vm3, %v1203_v39, -1000000.0 }
 0x289   : > { %v1652_v41 = vpop.f32.mrf.mxu0  ;;  %v1208_v42 = vsel %vm647_vm2, %v1207_v40, -inf }
 0x28a   : > { %1209 = vmax.xlane.f32.xlu1 %v1208_v42 }
 0x29b   : > { %v726_v43 = vpop.xlane.xlu1 %725 }
 0x29c   : > { %v727_v44 = vsub.f32 %v723_v28, %v726_v43 }
 0x29e   : > { %v728_v45 = vmul.f32 1.442695, %v727_v44 }
 0x2a0   : > { %1752 = vpow2.f32 %v728_v45 }
 0x2ad   : > { %v1753_v46 = vpop.eup %1752 }
 0x2ae   : > { %v730_v47 = vsel %vm647_vm2, %v1753_v46, 0.0 }
 0x2af   : > { %731 = vadd.xlane.f32.xlu0 %v730_v47 }
 0x30b   : > { %v885_v48 = vpop.xlane.xlu0 %884 }
 0x30c   : > { %v886_v49 = vsub.f32 %v882_v32, %v885_v48 }
 0x30e   : > { %v887_v50 = vmul.f32 1.442695, %v886_v49 }
 0x30f   : > { %v1048_v51 = vpop.xlane.xlu0 %1047 }
 0x310   : > { %1754 = vpow2.f32 %v887_v50  ;;  %v1049_v52 = vsub.f32 %v1045_v36, %v1048_v51 }
 0x312   : > { %v1050_v53 = vmul.f32 1.442695, %v1049_v52 }
 0x313   : > { %v1210_v58 = vpop.xlane.xlu1 %1209 }
 0x314   : > { %1756 = vpow2.f32 %v1050_v53  ;;  %v1211_v60 = vsub.f32 %v1207_v40, %v1210_v58 }
 0x316   : > { %v1212_v61 = vmul.f32 1.442695, %v1211_v60 }
 0x31d   : > { %v1755_v54 = vpop.eup %1754 }
 0x31e   : > { %v889_v55 = vsel %vm647_vm2, %v1755_v54, 0.0 }
 0x31f   : > { %890 = vadd.xlane.f32.xlu1 %v889_v55 }
 0x321   : > { %v1757_v56 = vpop.eup %1756 }
 0x322   : > { %v1052_v57 = vsel %vm647_vm2, %v1757_v56, 0.0 }
 0x323   : > { %1053 = vadd.xlane.f32.xlu0 %v1052_v57 }
 0x330   : > { %1057 = vrot.lane.b32.xlu1 %v2266_v16, %s1979_s18 }
 0x338   : > { %v732_v59 = vpop.xlane.xlu0 %731 }
 0x339   : > { %895 = vrot.lane.b32.xlu0 %v2266_v16, %s1978_s29  ;;  %1758 = vrcp.f32 %v732_v59  ;;  %s1561_s29 = sshll.u32 %s2053_s13, 7  ;;  %s1983_s13 = smov [#allocation12]  }
 0x33a   : > { %1760 = vpow2.f32 %v1212_v61  ;;  %s2344_s11 = scalar_lea.hbm %s2393_s8, %s1561_s29  ;;  %s1892_s4 = sshll.u32 %s1983_s13, 4  ;;  %s1893_s4 = int_to_ptr.vmem [resolvable:$false] %s1892_s4 }
 0x33b   : > { %s1894_s6 = scalar_lea.vmem %s1893_s4, 256 }
 0x346   : > { %v1759_v62 = vpop.eup %1758 }
 0x347   : > { %v734_v63 = vmul.f32 %v1759_v62, %v1753_v46  ;;  %v1761_v1 = vpop.eup %1760 }
 0x348   : > { %v1214_v2 = vsel %vm647_vm2, %v1761_v1, 0.0 }
 0x349   : > { %1626 = vmatmul.mubr.msk.f32.vlgmr.msra.gmra.mxu1 %vm647_vm2, %v734_v63 }
 0x34a   : > { %1635 = vmatprep.mubr.msk.f32.mxu1 %vm1976_vm0, %v1975_v0 }
 0x354   : > { %1215 = vadd.xlane.f32.xlu1 %v1214_v2 }
 0x365   : > { %1219 = vrot.lane.b32.xlu1 %v2266_v16, %s1977_s17  ;;  %s1404_s17 = sshll.u32 %s379_s30, 4  ;;  %s2339_s17 = int_to_ptr.vmem [resolvable:$true] %s1404_s17 }
 0x366   : > { %s1888_s21 = scalar_lea.vmem %s2339_s17, 128  ;;  %p1895_p6 = scmp.lt.s32.totalorder %s2339_s17, %s1893_s4 }
 0x367   : > { %p1889_p12 = scmp.ne.s32.totalorder %s2339_s17, %s1888_s21  ;;  %p1896_p8 = scmp.lt.s32.totalorder %s1894_s6, %s1888_s21 }
 0x369   : > { %p1890_p4 = pnand %p1889_p12, %p2420_p0  ;;  %p1897_p9 = por %p1896_p8, %p1895_p6 }
 0x36b   : > { %p1891_p10 = pneg %p1890_p4 }
 0x36d   : > { %p1898_p1 = pnand %p1897_p9, %p1891_p10 }
 0x3a8   : > { %v891_v3 = vpop.xlane.xlu1 %890 }
 0x3a9   : > { %1762 = vrcp.f32 %v891_v3 }
 0x3ac   : > { %v1054_v4 = vpop.xlane.xlu0 %1053  ;;  %v1058_v8 = vpop.permute.xlu1 %1057 }
 0x3ad   : > { %1764 = vrcp.f32 %v1054_v4 }
 0x3b0   : > { %v896_v5 = vpop.permute.xlu0 %895 }
 0x3b1   : > { %1634 = vmatpush3.msra.mxu1 %v896_v5 }
 0x3b2   : > { %1643 = vmatprep.subr.mxu1 %v1975_v0 }
 0x3b6   : > { %v1763_v6 = vpop.eup %1762 }
 0x3b7   : > { %v893_v7 = vmul.f32 %v1763_v6, %v1755_v54 }
 0x3b9   : > { %1636 = vmatmul.mubr.msk.f32.vlgmr.msra.gmra.mxu1 %vm647_vm2, %v893_v7 }
 0x3ba   : > { %v1765_v9 = vpop.eup %1764  ;;  %1644 = vmatpush3.msra.mxu1 %v1058_v8  ;;  %1645 = vmatprep.mubr.msk.f32.mxu1 %vm1976_vm0, %v1975_v0 }
 0x3bb   : > { %v1056_v10 = vmul.f32 %v1765_v9, %v1757_v56  ;;  %1653 = vmatprep.subr.mxu1 %v1975_v0 }
 0x3bd   : > { %1646 = vmatmul.mubr.msk.f32.vlgmr.msra.gmra.mxu1 %vm647_vm2, %v1056_v10 }
 0x3be   : > { %1655 = vmatprep.mubr.msk.f32.mxu1 %vm1976_vm0, %v1975_v0 }
 0x3dd   : > { %v1216_v11 = vpop.xlane.xlu1 %1215 }
 0x3de   : > { %1766 = vrcp.f32 %v1216_v11 }
 0x3e1   : > { %v1220_v12 = vpop.permute.xlu1 %1219 }
 0x3e2   : > { %1654 = vmatpush3.msra.mxu1 %v1220_v12 }
 0x3eb   : > { %v1767_v13 = vpop.eup %1766 }
 0x3ec   : > { %v1218_v14 = vmul.f32 %v1767_v13, %v1761_v1 }
 0x3ee   : > { %1656 = vmatmul.mubr.msk.f32.vlgmr.msra.gmra.mxu1 %vm647_vm2, %v1218_v14 }
 0x409   : > { %v804_v15 = vpop.f32.mrf.mxu1 }
 0x40b   : > { %v1627_v16 = vpop.f32.mrf.mxu1 }
 0x479   : > { %v967_v20 = vpop.f32.mrf.mxu1 }
 0x47a   : > { %1296 = vrot.lane.b32.xlu0 %v967_v20, %s1980_s22 }
 0x47b   : > { %v1637_v21 = vpop.f32.mrf.mxu1 }
 0x47d   : > { %v1129_v22 = vpop.f32.mrf.mxu1 }
 0x47e   : > { %1300 = vrot.lane.b32.xlu1 %v1129_v22, %s1981_s26 }
 0x47f   : > { %v1647_v23 = vpop.f32.mrf.mxu1 }
 0x4ae   : > { %v1291_v25 = vpop.f32.mrf.mxu1 }
 0x4af   : > { %1304 = vrot.lane.b32.xlu0 %v1291_v25, %s1982_s27 }
 0x4b0   : > { %v1657_v26 = vpop.f32.mrf.mxu1 }
 0x4ec   : > { %v1297_v0 = vpop.permute.xlu0 %1296 }
 0x4ed   : > { %v1307_v28 = vsel %vm647_vm2, %v804_v15, %v1297_v0 }
 0x4f0   : > { %v1301_v27 = vpop.permute.xlu1 %1300 }
 0x4f1   : > { %v1308_v29 = vsel %vm389_vm1, %v1307_v28, %v1301_v27 }
 0x521   : > { %v1305_v30 = vpop.permute.xlu0 %1304 }
 0x522   : > { %v1310_v31 = vsel %vm1309_vm4, %v1308_v29, %v1305_v30 }
 0x523   : > { %1667 = vmatmul.mubr.msk.f32.vlgmr.msra.gmra.mxu0 %vm1315_vm5, %v1310_v31 }
 0x5e3   : > { %v1385_v32 = vpop.f32.mrf.mxu0 }
 0x5e4   : > { %1389 = vst [vmem:[%s379_s30] sm:$0xff] %v1385_v32 }
 0x5e5   : > { %v1668_v33 = vpop.f32.mrf.mxu0 }
 0x5e6   : > { %1901 = shalt.err (!%p1898_p1)
}
 0x5e7   : > { %s1902_s23 = scalar_lea.hbm %s2344_s11, 128  ;;  %s1906_s22 = scalar_lea.hbm %s2393_s8, 256 }
 0x5e8   : > { %p1903_p5 = scmp.ne.s32.totalorder %s2344_s11, %s1902_s23  ;;  %p1907_p7 = scmp.lt.s32.totalorder %s2344_s11, %s2393_s8 }
 0x5e9   : > { %p1908_p11 = scmp.lt.s32.totalorder %s1906_s22, %s1902_s23 }
 0x5ea   : > { %p1904_p13 = pnand %p1903_p5, %p2420_p0 }
 0x5eb   : > { %p1909_p3 = por %p1908_p11, %p1907_p7 }
 0x5ec   : > { %p1905_p2 = pneg %p1904_p13 }
 0x5ee   : > { %p1910_p12 = pnand %p1909_p3, %p1905_p2 }
 0x5f0   : > { %1913 = shalt.err (!%p1910_p12)
}
 0x5f1   : > { %1681 = dma.vmem_to_hbm [thread:$0]  (%p2420_p0), %s2339_s17, 128, %s2344_s11, %s1391_s20  }
 0x5f2 PF: > { %s1416_s24 = sand.u32 1, %s1954_s0   ;;  %p2421_p4 = scmp.ne.s32.totalorder %s2403_s16, 0 }
 0x5f3   : > { %p2422_p10 = scmp.ge.s32.totalorder %s1966_s12, 2  ;;  %s1417_s27 = scalar_lea.sflag [#allocation6], %s1416_s24 }
 0x5f5   : > { %p1698_p6 = pnand %p2422_p10, %p2421_p4 }
 0x5f7   : > { %p1699_p8 = pneg %p1698_p6 }
 0x5f9   : > { %1949 = dma.done.wait (%p1699_p8), %s1417_s27, 128  }
 0x5fa   : > { %1951 = vsyncadd (%p1699_p8), %s1417_s27, 4294967168  ;;  %s2423_s30 = sld [smem:[#allocation19_spill]]  ;;  %p31_p9 = scmp.ge.s32.totalorder %s2104_s9, 4  }
 0x5fb   : > { %s2424_s11 = sld [smem:[#allocation20_spill]]  ;;  %s2425_s0 = smov %s1958_s10 }
 0x5fc   : > { %s2427_s12 = smov %s2104_s9  ;;  %33 = sbr.rel (!%p31_p9) target bundleno = 24 (0x18), region = 117 }
 0x600   : > { %s2426_s10 = smov %s2423_s30 }
 0x601   :  { %1422 = vsyncpa [#allocation5], 1 }
 0x602   :  { %1424 = vsyncpa [#allocation5 + $0x1], 1 }
 0x603   :  { %1425 = vsyncpa [#allocation8], 1 }
 0x604   :  { %1427 = vsyncpa [#allocation8 + $0x1], 1 }
 0x605   :  { %1428 = vsyncpa [#allocation11], 1 }
 0x606   :  { %1429 = vsyncpa [#allocation6], 1 }
 0x607   :  { %1431 = vsyncpa [#allocation6 + $0x1], 1 }

</bundles_post_ra>
